<compile_context>
chip_gen: v5e
topology: v5e:2x2
jax: 0.10.0
libtpu: 0.0.40
codegen_flags: <defaults>
</compile_context>

<pallas_src>
import jax
import jax.numpy as jnp
from jax.experimental import pallas as pl
from jax.experimental.pallas import tpu as pltpu


def _gating_kernel(x_ref, w_ref, b_ref, o_ref):
    # x_ref: (TM, D), w_ref: (D, E), b_ref: (1, E), o_ref: (TM, E)
    logits = jnp.dot(x_ref[...], w_ref[...],
                     preferred_element_type=jnp.float32)      # MXU, f32 acc
    logits = logits + b_ref[...].astype(jnp.float32)          # broadcast (1, E)
    m = jnp.max(logits, axis=-1, keepdims=True)               # stable softmax
    e = jnp.exp(logits - m)                                    # EUP
    denom = jnp.sum(e, axis=-1, keepdims=True)                 # XLU reduce
    # Exact reciprocal (not approx): cost is one op per row, fully hidden
    # under the x-stream DMA; exact normalization for downstream routing.
    o_ref[...] = (e * pl.reciprocal(denom, approx=False)).astype(o_ref.dtype)


def _round_up(x, m):
    return ((x + m - 1) // m) * m


def _tpu_budget():
    """Generation-aware (VMEM budget, vmem_limit cap, TC count) heuristic."""
    try:
        info = pltpu.get_tpu_info()
        vmem_cap = int(getattr(info, "vmem_capacity_bytes", 64 << 20))
    except Exception:
        vmem_cap = 64 << 20                         # conservative (v7x-like)
    if vmem_cap <= (64 << 20):
        # v7x-class: 64 MiB VMEM per TC, 2 TCs/chip.  Leave headroom for
        # Mosaic internal scratch/semaphores (don't request the full 64 MiB).
        return 28 << 20, 48 << 20, 2
    # v5e / v6e: 128 MiB VMEM, single TensorCore.
    return 80 << 20, 100 << 20, 1


def _choose_tile(M, D, E, itemsize, budget, num_cores):
    """Largest row tile that fits the VMEM budget (double-buffered streams)."""
    # Resident weight + bias are still double-buffered by the pipeline even
    # with a constant index_map.
    fixed = (2 * D * E + 2 * E) * itemsize
    # Double-buffered x/out tiles + ~3 f32 [tm, E] in-kernel temporaries.
    per_row = (2 * D + 2 * E) * itemsize + 3 * E * 4
    avail = max(budget - fixed, 8 * per_row)
    tm = max(8, avail // per_row)
    tm = min(tm, 1024)
    tm = min(tm, _round_up(max(M, 1), 8))           # don't blow tiny M up to huge tiles
    if num_cores >= 2:
        # Keep >= 4 grid steps so the 2 TCs (megacore) have work to shard,
        # but never shrink below 512 rows (HBM-roofline tradeoff on v7x).
        while tm > 512 and pl.cdiv(M, tm) < 4:
            tm //= 2
    tm = max(8, (tm // 8) * 8)
    return tm


def gating_network(x, w, b, *, tm=None, force_pallas=False):
    """x: (..., D), w: (D, E), b: (E,). Returns softmax(x @ w + b, axis=-1)."""
    orig_shape = x.shape
    D = orig_shape[-1]
    E = w.shape[-1]
    x2 = x.reshape(-1, D)
    M = x2.shape[0]
    itemsize = jnp.dtype(x.dtype).itemsize

    # Small-problem fallback: a single-block pallas_call pays fixed grid/DMA
    # setup overhead that dwarfs the work; XLA's fused matmul+softmax wins.
    if not force_pallas and M * D * itemsize < (1 << 20):
        logits = jnp.dot(x2, w, preferred_element_type=jnp.float32) + b
        out = jax.nn.softmax(logits, axis=-1).astype(x.dtype)
        return out.reshape(*orig_shape[:-1], E)

    budget, limit_cap, num_cores = _tpu_budget()
    if tm is None:
        tm = _choose_tile(M, D, E, itemsize, budget, num_cores)

    b2 = b.reshape(1, E)

    # Actual VMEM need: double-buffered x/out tiles, double-buffered resident
    # weight/bias, f32 intermediates; plus headroom for Mosaic scratch.
    vmem_need = ((2 * tm * D + 2 * tm * E + 2 * D * E + 2 * E) * itemsize
                 + 3 * tm * E * 4)
    vmem_limit = int(min(limit_cap, max(vmem_need + (4 << 20), 32 << 20)))

    # Ragged last block: no wrapper-side pad/slice (that re-reads and
    # re-writes the whole [M, D] activation in HBM).  OOB reads in the last
    # block are dead lanes; OOB output writes are masked by Pallas.
    grid = (pl.cdiv(M, tm),)

    out = pl.pallas_call(
        _gating_kernel,
        out_shape=jax.ShapeDtypeStruct((M, E), x.dtype),
        grid_spec=pltpu.PrefetchScalarGridSpec(
            num_scalar_prefetch=0,
            grid=grid,
            in_specs=[
                pl.BlockSpec((tm, D), lambda i: (i, 0)),   # x row-tile (streamed)
                pl.BlockSpec((D, E), lambda i: (0, 0)),    # full weight, resident
                pl.BlockSpec((1, E), lambda i: (0, 0)),    # bias, resident
            ],
            out_specs=pl.BlockSpec((tm, E), lambda i: (i, 0)),
        ),
        compiler_params=pltpu.CompilerParams(
            dimension_semantics=("parallel",),
            vmem_limit_bytes=vmem_limit,
        ),
    )(x2, w, b2)

    return out.reshape(*orig_shape[:-1], E)


def gating_network_ref(x, w, b):
    logits = jnp.einsum("...d,de->...e", x, w) + b
    return jax.nn.softmax(logits, axis=-1)


if __name__ == "__main__":
    # Small shapes consistent with the module: d_model=32, num_experts=8,
    # batch=2, seq=8 -> 16 token rows.
    key = jax.random.PRNGKey(0)
    k_x, k_w, k_b = jax.random.split(key, 3)

    batch, seq, d_model, num_experts = 2, 8, 32, 8

    x = jax.random.normal(k_x, (batch, seq, d_model), dtype=jnp.float32)
    # Deterministic parameter init (mimics nn.Linear's uniform(-1/sqrt(D), 1/sqrt(D))).
    bound = 1.0 / (d_model ** 0.5)
    w = jax.random.uniform(k_w, (d_model, num_experts), dtype=jnp.float32,
                           minval=-bound, maxval=bound)
    b = jax.random.uniform(k_b, (num_experts,), dtype=jnp.float32,
                           minval=-bound, maxval=bound)

    # Force the Pallas path so the kernel itself is exercised at this small size
    # (the production wrapper would take the XLA fallback here).
    out = gating_network(x, w, b, force_pallas=True)
    out = jax.block_until_ready(out)

    ref = gating_network_ref(x, w, b)
    assert out.shape == (batch, seq, num_experts)
    assert jnp.allclose(out, ref, atol=1e-5, rtol=1e-5), "mismatch vs reference"
    assert jnp.allclose(jnp.sum(out, axis=-1), 1.0, atol=1e-5)

    # Second case: row count (3*7=21) not a multiple of the tile -> exercises
    # the ragged last block / masked OOB writes with no wrapper-side padding.
    x_ragged = jax.random.normal(jax.random.PRNGKey(1), (3, 7, d_model),
                                 dtype=jnp.float32)
    out2 = jax.block_until_ready(gating_network(x_ragged, w, b, force_pallas=True))
    ref2 = gating_network_ref(x_ragged, w, b)
    assert out2.shape == (3, 7, num_experts)
    assert jnp.allclose(out2, ref2, atol=1e-5, rtol=1e-5), "mismatch vs reference (ragged)"

    print("KERNEL_OK")
</pallas_src>

<mosaic_0001>
module attributes {stable_mosaic.version = 11 : i64} {
  func.func @_gating_kernel(%arg0: i32, %arg1: memref<16x32xf32, #tpu.memory_space<vmem>>, %arg2: memref<32x8xf32, #tpu.memory_space<vmem>>, %arg3: memref<1x8xf32, #tpu.memory_space<vmem>>, %arg4: memref<16x8xf32, #tpu.memory_space<vmem>>) attributes {dimension_semantics = [#tpu.dimension_semantics<parallel>], iteration_bounds = array<i64: 1>, scalar_prefetch = 0 : i64, scratch_operands = 0 : i64, tpu.core_type = #tpu.core_type<tc>, window_params = [{transform_indices = @transform_0, window_bounds = array<i64: 16, 32>}, {pipeline_mode = #tpu.pipeline_mode<synchronous>, transform_indices = @transform_1, window_bounds = array<i64: 32, 8>}, {pipeline_mode = #tpu.pipeline_mode<synchronous>, transform_indices = @transform_2, window_bounds = array<i64: 1, 8>}, {transform_indices = @transform_3, window_bounds = array<i64: 16, 8>}]} {
    %c0 = arith.constant 0 : index
    %c0_0 = arith.constant 0 : index
    %0 = vector.load %arg1[%c0, %c0_0] : memref<16x32xf32, #tpu.memory_space<vmem>>, vector<16x32xf32>
    %c0_1 = arith.constant 0 : index
    %c0_2 = arith.constant 0 : index
    %1 = vector.load %arg2[%c0_1, %c0_2] : memref<32x8xf32, #tpu.memory_space<vmem>>, vector<32x8xf32>
    %cst = arith.constant dense<0.000000e+00> : vector<16x8xf32>
    %2 = tpu.matmul %0, %1, %cst {dimension_numbers = #tpu.dot_dimension_numbers<[1], [0], [0], [1], [0, 0, 1, 1], [], []>} : vector<16x32xf32>, vector<32x8xf32>, vector<16x8xf32> -> vector<16x8xf32>
    %c0_3 = arith.constant 0 : index
    %c0_4 = arith.constant 0 : index
    %3 = vector.load %arg3[%c0_3, %c0_4] : memref<1x8xf32, #tpu.memory_space<vmem>>, vector<1x8xf32>
    %4 = vector.broadcast %3 : vector<1x8xf32> to vector<16x8xf32>
    %5 = arith.addf %2, %4 : vector<16x8xf32>
    %cst_5 = arith.constant dense<0xFF800000> : vector<16xf32>
    %6 = vector.multi_reduction <maximumf>, %5, %cst_5 [1] : vector<16x8xf32> to vector<16xf32>
    %7 = vector.shape_cast %6 : vector<16xf32> to vector<16x1xf32>
    %8 = vector.broadcast %7 : vector<16x1xf32> to vector<16x8xf32>
    %9 = arith.subf %5, %8 : vector<16x8xf32>
    %10 = math.exp %9 : vector<16x8xf32>
    %cst_6 = arith.constant dense<0.000000e+00> : vector<16xf32>
    %11 = vector.multi_reduction <add>, %10, %cst_6 [1] : vector<16x8xf32> to vector<16xf32>
    %12 = vector.shape_cast %11 : vector<16xf32> to vector<16x1xf32>
    %13 = tpu.reciprocal %12 : vector<16x1xf32> -> vector<16x1xf32>
    %14 = vector.broadcast %13 : vector<16x1xf32> to vector<16x8xf32>
    %15 = arith.mulf %10, %14 : vector<16x8xf32>
    %c0_7 = arith.constant 0 : index
    %c0_8 = arith.constant 0 : index
    %16 = vector.load %arg4[%c0_7, %c0_8] : memref<16x8xf32, #tpu.memory_space<vmem>>, vector<16x8xf32>
    tpu.vector_store %arg4[%c0_7, %c0_8], %15 {strides = array<i32>} : memref<16x8xf32, #tpu.memory_space<vmem>>, vector<16x8xf32>,
    return
  }
  func.func @transform_0(%arg0: i32) -> (i32, i32) {
    %c0_i32 = arith.constant 0 : i32
    %c0_i32_0 = arith.constant 0 : i32
    return %arg0, %c0_i32 : i32, i32
  }
  func.func @transform_1(%arg0: i32) -> (i32, i32) {
    %c0_i32 = arith.constant 0 : i32
    %c0_i32_0 = arith.constant 0 : i32
    %c0_i32_1 = arith.constant 0 : i32
    return %c0_i32, %c0_i32_0 : i32, i32
  }
  func.func @transform_2(%arg0: i32) -> (i32, i32) {
    %c0_i32 = arith.constant 0 : i32
    %c0_i32_0 = arith.constant 0 : i32
    %c0_i32_1 = arith.constant 0 : i32
    return %c0_i32, %c0_i32_0 : i32, i32
  }
  func.func @transform_3(%arg0: i32) -> (i32, i32) {
    %c0_i32 = arith.constant 0 : i32
    %c0_i32_0 = arith.constant 0 : i32
    return %arg0, %c0_i32 : i32, i32
  }
}

</mosaic_0001>

<bundles_post_ra>
// kernel: tpu_custom_call.1
= control target key start
LH: loop header
LB: loop body
LE: loop exit
PB: predicated region body
PF: predicated region fallthrough
CT: control target
= control target key end

     0   :  { %vm24_vm0 = vcmask 261120   ;;  %vm54_vm1 = vcmask 64512   ;;  %s177_s1 = inlined_call_operand.vmem [shape: f32[32,8], index: 1, kind: input, shape index: {}]   ;;  %s178_s2 = inlined_call_operand.vmem [shape: f32[1,8], index: 2, kind: input, shape index: {}]   ;;  %s179_s0 = inlined_call_operand.vmem [shape: f32[16,32], index: 0, kind: input, shape index: {}]   ;;  %s180_s3 = inlined_call_operand.vmem [shape: f32[16,8], index: 3, kind: output, shape index: {}]  }
   0x1   :  { %v19_v0 = vld [vmem:[%s177_s1 + $0x18] sm:$0xff]  ;;  %v18_v1 = vld [vmem:[%s177_s1 + $0x10] sm:$0xff]  ;;  %v17_v2 = vld [vmem:[%s177_s1 + $0x8] sm:$0xff] }
   0x2   :  { %43 = vmatpush.msra.mxu0 %v19_v0  ;;  %111 = vmatpush.msra.mxu1 %v19_v0  ;;  %v16_v3 = vld [vmem:[%s177_s1] sm:$0xff]  ;;  %v15_v5 = vld [vmem:[%s179_s0 + $0x8] sm:$0xff] }
   0x3   :  { %v14_v4 = vld [vmem:[%s179_s0] sm:$0xff] }
   0x4   :  { %44 = vmatpush.msra.mxu0 %v18_v1  ;;  %112 = vmatpush.msra.mxu1 %v18_v1  ;;  %v115_v6 = vld [vmem:[%s178_s2] ss:$0 sm:$0xff] }
   0x6   :  { %45 = vmatpush.msra.mxu0 %v17_v2  ;;  %113 = vmatpush.msra.mxu1 %v17_v2 }
   0x8   :  { %46 = vmatpush.msra.mxu0 %v16_v3  ;;  %114 = vmatpush.msra.mxu1 %v16_v3 }
   0x9   :  { %109 = vmatmul.msk.f32.vlgmr.msra.gmra.mxu0 %vm24_vm0, %v14_v4  ;;  %110 = vmatmul.msk.f32.vlgmr.msra.gmra.mxu1 %vm24_vm0, %v15_v5 }
  0x86   :  { %v48_v7 = vpop.f32.mrf.mxu0  ;;  %v51_v9 = vpop.f32.mrf.mxu1 }
  0x87   :  { %v49_v8 = vadd.f32 %v115_v6, %v48_v7  ;;  %v52_v11 = vadd.f32 %v115_v6, %v51_v9 }
  0x89   :  { %v55_v10 = vsel %vm54_vm1, %v49_v8, -inf  ;;  %v58_v12 = vsel %vm54_vm1, %v52_v11, -inf }
  0x8a   :  { %56 = vmax.xlane.f32.xlu0 %v55_v10 }
  0x92   :  { %59 = vmax.xlane.f32.xlu0 %v58_v12 }
  0xfd   :  { %v57_v13 = vpop.xlane.xlu0 %56 }
  0xfe   :  { %v61_v14 = vsub.f32 %v49_v8, %v57_v13 }
 0x100   :  { %v63_v15 = vmul.f32 1.442695, %v61_v14 }
 0x102   :  { %116 = vpow2.f32 %v63_v15 }
 0x105   :  { %v60_v16 = vpop.xlane.xlu0 %59 }
 0x106   :  { %v62_v17 = vsub.f32 %v52_v11, %v60_v16 }
 0x108   :  { %v117_v18 = vpop.eup %116  ;;  %v65_v19 = vmul.f32 1.442695, %v62_v17 }
 0x109   :  { %v67_v20 = vsel %vm54_vm1, %v117_v18, 0.0 }
 0x10a   :  { %118 = vpow2.f32 %v65_v19  ;;  %68 = vadd.xlane.f32.xlu1 %v67_v20 }
 0x110   :  { %v119_v21 = vpop.eup %118 }
 0x111   :  { %v70_v22 = vsel %vm54_vm1, %v119_v21, 0.0 }
 0x112   :  { %71 = vadd.xlane.f32.xlu1 %v70_v22 }
 0x17d   :  { %v69_v23 = vpop.xlane.xlu1 %68 }
 0x17e   :  { %120 = vrcp.f32 %v69_v23  ;;  %v84_v28 = vand.u32 2147483648, %v69_v23  ;;  %v82_v30 = vand.u32 2147483647, %v69_v23  ;;  %vm78_vm3 = vweird.f32 %v69_v23 }
 0x180   :  { %v85_v33 = vor.u32 1.1754944e-38, %v84_v28  ;;  %vm83_vm5 = vcmp.eq.f32.partialorder %v82_v30, 8.507059e+37 }
 0x184   :  { %v121_v24 = vpop.eup %120 }
 0x185   :  { %v74_v25 = vmul.f32 %v121_v24, %v69_v23  ;;  %v72_v26 = vpop.xlane.xlu1 %71  ;;  %vm79_vm2 = vweird.f32 %v121_v24 }
 0x186   :  { %122 = vrcp.f32 %v72_v26  ;;  %vm80_vm4 = vmor %vm78_vm3, %vm79_vm2  ;;  %v98_v39 = vand.u32 2147483648, %v72_v26  ;;  %v96_v41 = vand.u32 2147483647, %v72_v26  ;;  %vm92_vm7 = vweird.f32 %v72_v26 }
 0x187   :  { %v75_v27 = vsub.f32 1.0, %v74_v25 }
 0x188   :  { %v99_v43 = vor.u32 1.1754944e-38, %v98_v39  ;;  %vm97_vm9 = vcmp.eq.f32.partialorder %v96_v41, 8.507059e+37 }
 0x189   :  { %v76_v29 = vmul.f32 %v121_v24, %v75_v27 }
 0x18b   :  { %v77_v31 = vadd.f32 %v121_v24, %v76_v29 }
 0x18c   :  { %v123_v32 = vpop.eup %122 }
 0x18d   :  { %v81_v34 = vsel %vm80_vm4, %v121_v24, %v77_v31  ;;  %v88_v35 = vmul.f32 %v123_v32, %v72_v26  ;;  %vm93_vm6 = vweird.f32 %v123_v32 }
 0x18e   :  { %v86_v36 = vsel %vm83_vm5, %v85_v33, %v81_v34  ;;  %vm94_vm8 = vmor %vm92_vm7, %vm93_vm6 }
 0x18f   :  { %v101_v37 = vmul.f32 %v117_v18, %v86_v36  ;;  %v89_v38 = vsub.f32 1.0, %v88_v35 }
 0x191   :  { %103 = vst.msk [vmem:[%s180_s3] sm:$0xff] %vm54_vm1, %v101_v37  ;;  %v90_v40 = vmul.f32 %v123_v32, %v89_v38 }
 0x193   :  { %v91_v42 = vadd.f32 %v123_v32, %v90_v40 }
 0x195   :  { %v95_v44 = vsel %vm94_vm8, %v123_v32, %v91_v42 }
 0x196   :  { %v100_v45 = vsel %vm97_vm9, %v99_v43, %v95_v44 }
 0x197   :  { %v102_v46 = vmul.f32 %v119_v21, %v100_v45 }
 0x199   :  { %104 = vst.msk [vmem:[%s180_s3 + $0x8] sm:$0xff] %vm54_vm1, %v102_v46 }

</bundles_post_ra>
